<compile_context>
chip_gen: v7x
topology: tpu7x:2x2x1
jax: 0.10.0
libtpu: 0.0.40
codegen_flags: <defaults>
</compile_context>

<pallas_src>
from functools import partial

import numpy as np
import jax
import jax.numpy as jnp
from jax.experimental import pallas as pl
from jax.experimental.pallas import tpu as pltpu


_TAPS = ((0, 0), (0, 1), (1, 0), (1, 1))  # 2x2 conv taps, k = 2*di + dj


def _silu(v):
    return v * jax.nn.sigmoid(v)


def unet_encoder_kernel(xt_ref, tadd_ref, mr_ref, md_ref,
                        w1t_ref, b1_ref, w2t_ref, b2_ref, wrt_ref, br_ref,
                        o_ref, *, W, L):
    f32 = jnp.float32

    m_r = mr_ref[...]               # (1, L): valid mask for the (0,+1) shift (j + 1 < W)
    m_d = md_ref[...]               # (1, L): valid mask for the (+1,0) shift (i + 1 < H)
    m_rd = m_r * m_d                # (1, L): valid mask for the (+1,+1) shift

    def conv_taps(v):
        """Rows for taps (0,0),(0,1),(1,0),(1,1) of a 2x2 'same' conv via XLU lane rolls.

        Layout is (channels, B*H*W): a lane roll by -(di*W+dj) fetches the (i+di, j+dj)
        neighbour; the masks zero out bottom/right 'same' padding and batch boundaries,
        exactly matching PyTorch's asymmetric even-kernel padding.
        """
        v_r = pltpu.roll(v, shift=L - 1, axis=1) * m_r            # neighbour (i, j+1)
        v_d = pltpu.roll(v, shift=L - W, axis=1) * m_d            # neighbour (i+1, j)
        v_rd = pltpu.roll(v, shift=L - W - 1, axis=1) * m_rd      # neighbour (i+1, j+1)
        return jnp.concatenate([v, v_r, v_d, v_rd], axis=0)       # (4*C, L)

    # ---- conv1: 2x2 'same' as ONE fused matmul over all 4 taps, + bias, SiLU, + time embedding ----
    x = xt_ref[...]                                                          # (Cin, L)
    acc1 = jnp.dot(w1t_ref[...], conv_taps(x), preferred_element_type=f32)   # (Cout, L)
    h = _silu(acc1 + b1_ref[...]) + tadd_ref[...]                            # tadd broadcast over channels

    # ---- attention=False -> nn.Identity() ----
    # TODO(synk): attention=True branch (AttentionConv + MultiheadAttention) not implemented.

    # ---- conv2: same 2x2 'same' structure on h, fused matmul over all 4 taps ----
    acc2 = jnp.dot(w2t_ref[...], conv_taps(h), preferred_element_type=f32)   # (Cout, L)
    h_out = _silu(acc2 + b2_ref[...])

    # ---- residual branch: 1x1 conv on original input, SiLU ----
    xr = _silu(jnp.dot(wrt_ref[...], x, preferred_element_type=f32) + br_ref[...])

    o_ref[...] = (h_out + xr).astype(o_ref.dtype)                            # lane-dense (Cout, L) store


@jax.jit
def unet_encoder_layer(x_nchw, t, params):
    """x_nchw: (B, Cin, H, W) float32, t: (B, Dt) float32 -> (B, Cout, H, W)."""
    B, Cin, H, W = x_nchw.shape
    Cout = params['b1'].shape[-1]
    assert W == Cout, "PyTorch module's t-broadcast requires W == out_channels"
    L = B * H * W

    f32 = jnp.float32
    x = x_nchw.astype(f32)

    # ---- plain-JAX prep: layout plumbing + the single-Linear time MLP -------------------
    xt = x.transpose(1, 0, 2, 3).reshape(Cin, L)                             # (Cin, L) channels-on-sublanes

    temb = t.astype(f32) @ params['wt'] + params['bt']                       # (B, Cout)
    # PyTorch `x + t[:, None, None]`: adds temb[b, w] at NCHW (b, c, h, w)  (W == Cout).
    tadd = jnp.broadcast_to(temb[:, None, :], (B, H, W)).reshape(1, L)

    # Boundary-validity masks (static constants): destination lane l holds (b, i, j).
    lidx = np.arange(L)
    jcol = lidx % W
    irow = (lidx // W) % H
    m_r = jnp.asarray((jcol < W - 1).astype(np.float32).reshape(1, L))       # (0,+1) tap valid
    m_d = jnp.asarray((irow < H - 1).astype(np.float32).reshape(1, L))       # (+1,0) tap valid

    w1t = params['w1'].transpose(2, 0, 1).reshape(Cout, 4 * Cin)             # (Cout, 4*Cin), tap-major cols
    w2t = params['w2'].transpose(2, 0, 1).reshape(Cout, 4 * Cout)            # (Cout, 4*Cout)
    wrt = params['wr'].T                                                     # (Cout, Cin)
    b1c = params['b1'].reshape(Cout, 1)
    b2c = params['b2'].reshape(Cout, 1)
    brc = params['br'].reshape(Cout, 1)

    def full(shape):
        return pl.BlockSpec(shape, lambda i: (0,) * len(shape))

    out = pl.pallas_call(
        partial(unet_encoder_kernel, W=W, L=L),
        out_shape=jax.ShapeDtypeStruct((Cout, L), f32),
        grid_spec=pltpu.PrefetchScalarGridSpec(
            num_scalar_prefetch=0,
            grid=(1,),                                   # whole problem in a single grid step
            in_specs=[
                full((Cin, L)),           # xt   (original input, channels-on-sublanes)
                full((1, L)),             # tadd (time embedding, broadcast over channels)
                full((1, L)),             # m_r  (right-neighbour validity mask)
                full((1, L)),             # m_d  (down-neighbour validity mask)
                full((Cout, 4 * Cin)),    # w1t
                full((Cout, 1)),          # b1
                full((Cout, 4 * Cout)),   # w2t
                full((Cout, 1)),          # b2
                full((Cout, Cin)),        # wrt  (1x1 residual conv)
                full((Cout, 1)),          # br
            ],
            out_specs=full((Cout, L)),
        ),
        compiler_params=pltpu.CompilerParams(dimension_semantics=("arbitrary",)),
    )(xt, tadd, m_r, m_d, w1t, b1c, w2t, b2c, wrt, brc)

    # (Cout, B*H*W) -> (B, Cout, H, W)   (channels already on the leading axis: no lane transpose)
    return out.reshape(Cout, B, H, W).transpose(1, 0, 2, 3)


def reference(x_nchw, t, params):
    """Plain-JAX reproduction of the PyTorch forward (NCHW), for validation."""
    def conv2x2_same(x, w4, b):
        B, C, H, W = x.shape
        xp = jnp.pad(x, ((0, 0), (0, 0), (0, 1), (0, 1)))    # bottom/right, matches torch 'same' k=2
        out = jnp.zeros((B, w4.shape[-1], H, W), jnp.float32)
        for k, (di, dj) in enumerate(_TAPS):
            out = out + jnp.einsum('bchw,cd->bdhw', xp[:, :, di:di + H, dj:dj + W], w4[k])
        return out + b.reshape(1, -1, 1, 1)

    temb = t @ params['wt'] + params['bt']                    # (B, Cout)
    h = jax.nn.silu(conv2x2_same(x_nchw, params['w1'], params['b1']))
    h = h + temb[:, None, None, :]                            # the broadcast quirk (aligns with W)
    h = jax.nn.silu(conv2x2_same(h, params['w2'], params['b2']))
    xr = jax.nn.silu(jnp.einsum('bchw,cd->bdhw', x_nchw, params['wr'])
                     + params['br'].reshape(1, -1, 1, 1))
    return h + xr


if __name__ == "__main__":
    B, Cin, Cout, H, W, Dt = 2, 4, 8, 8, 8, 32   # W == Cout (required by the module's t broadcast)

    key = jax.random.PRNGKey(0)
    ks = jax.random.split(key, 10)
    x = jax.random.normal(ks[0], (B, Cin, H, W), jnp.float32)
    t = jax.random.normal(ks[1], (B, Dt), jnp.float32)

    params = dict(
        w1=0.2 * jax.random.normal(ks[2], (4, Cin, Cout), jnp.float32),   # conv1 taps (k = 2*di + dj)
        b1=0.1 * jax.random.normal(ks[3], (1, Cout), jnp.float32),
        w2=0.2 * jax.random.normal(ks[4], (4, Cout, Cout), jnp.float32),  # conv2 taps
        b2=0.1 * jax.random.normal(ks[5], (1, Cout), jnp.float32),
        wt=0.2 * jax.random.normal(ks[6], (Dt, Cout), jnp.float32),       # time MLP Linear
        bt=0.1 * jax.random.normal(ks[7], (1, Cout), jnp.float32),
        wr=0.2 * jax.random.normal(ks[8], (Cin, Cout), jnp.float32),      # residual 1x1 conv
        br=0.1 * jax.random.normal(ks[9], (1, Cout), jnp.float32),
    )

    out = jax.block_until_ready(unet_encoder_layer(x, t, params))
    ref = reference(x, t, params)

    assert out.shape == (B, Cout, H, W), out.shape
    assert jnp.allclose(out, ref, atol=1e-4, rtol=1e-4), float(jnp.max(jnp.abs(out - ref)))
    print("KERNEL_OK")
</pallas_src>

<mosaic_0001>
module attributes {stable_mosaic.version = 11 : i64} {
  func.func @unet_encoder_kernel(%arg0: i32, %arg1: memref<4x128xf32, #tpu.memory_space<vmem>>, %arg2: memref<1x128xf32, #tpu.memory_space<vmem>>, %arg3: memref<1x128xf32, #tpu.memory_space<vmem>>, %arg4: memref<1x128xf32, #tpu.memory_space<vmem>>, %arg5: memref<8x16xf32, #tpu.memory_space<vmem>>, %arg6: memref<8x1xf32, #tpu.memory_space<vmem>>, %arg7: memref<8x32xf32, #tpu.memory_space<vmem>>, %arg8: memref<8x1xf32, #tpu.memory_space<vmem>>, %arg9: memref<8x4xf32, #tpu.memory_space<vmem>>, %arg10: memref<8x1xf32, #tpu.memory_space<vmem>>, %arg11: memref<8x128xf32, #tpu.memory_space<vmem>>) attributes {dimension_semantics = [#tpu.dimension_semantics<arbitrary>], iteration_bounds = array<i64: 1>, scalar_prefetch = 0 : i64, scratch_operands = 0 : i64, tpu.core_type = #tpu.core_type<tc>, window_params = [{pipeline_mode = #tpu.pipeline_mode<synchronous>, transform_indices = @transform_0, window_bounds = array<i64: 4, 128>}, {pipeline_mode = #tpu.pipeline_mode<synchronous>, transform_indices = @transform_1, window_bounds = array<i64: 1, 128>}, {pipeline_mode = #tpu.pipeline_mode<synchronous>, transform_indices = @transform_2, window_bounds = array<i64: 1, 128>}, {pipeline_mode = #tpu.pipeline_mode<synchronous>, transform_indices = @transform_3, window_bounds = array<i64: 1, 128>}, {pipeline_mode = #tpu.pipeline_mode<synchronous>, transform_indices = @transform_4, window_bounds = array<i64: 8, 16>}, {pipeline_mode = #tpu.pipeline_mode<synchronous>, transform_indices = @transform_5, window_bounds = array<i64: 8, 1>}, {pipeline_mode = #tpu.pipeline_mode<synchronous>, transform_indices = @transform_6, window_bounds = array<i64: 8, 32>}, {pipeline_mode = #tpu.pipeline_mode<synchronous>, transform_indices = @transform_7, window_bounds = array<i64: 8, 1>}, {pipeline_mode = #tpu.pipeline_mode<synchronous>, transform_indices = @transform_8, window_bounds = array<i64: 8, 4>}, {pipeline_mode = #tpu.pipeline_mode<synchronous>, transform_indices = @transform_9, window_bounds = array<i64: 8, 1>}, {pipeline_mode = #tpu.pipeline_mode<synchronous>, transform_indices = @transform_10, window_bounds = array<i64: 8, 128>}]} {
    %c0 = arith.constant 0 : index
    %c0_0 = arith.constant 0 : index
    %0 = vector.load %arg3[%c0, %c0_0] : memref<1x128xf32, #tpu.memory_space<vmem>>, vector<1x128xf32>
    %c0_1 = arith.constant 0 : index
    %c0_2 = arith.constant 0 : index
    %1 = vector.load %arg4[%c0_1, %c0_2] : memref<1x128xf32, #tpu.memory_space<vmem>>, vector<1x128xf32>
    %2 = arith.mulf %0, %1 : vector<1x128xf32>
    %c0_3 = arith.constant 0 : index
    %c0_4 = arith.constant 0 : index
    %3 = vector.load %arg1[%c0_3, %c0_4] : memref<4x128xf32, #tpu.memory_space<vmem>>, vector<4x128xf32>
    %c0_5 = arith.constant 0 : index
    %c0_6 = arith.constant 0 : index
    %4 = vector.load %arg5[%c0_5, %c0_6] : memref<8x16xf32, #tpu.memory_space<vmem>>, vector<8x16xf32>
    %c127_i32 = arith.constant 127 : i32
    %5 = tpu.dynamic_rotate %3 by %c127_i32 dim 1 : vector<4x128xf32>, i32 -> vector<4x128xf32>
    %6 = vector.broadcast %0 : vector<1x128xf32> to vector<4x128xf32>
    %7 = arith.mulf %5, %6 : vector<4x128xf32>
    %c120_i32 = arith.constant 120 : i32
    %8 = tpu.dynamic_rotate %3 by %c120_i32 dim 1 : vector<4x128xf32>, i32 -> vector<4x128xf32>
    %9 = vector.broadcast %1 : vector<1x128xf32> to vector<4x128xf32>
    %10 = arith.mulf %8, %9 : vector<4x128xf32>
    %c119_i32 = arith.constant 119 : i32
    %11 = tpu.dynamic_rotate %3 by %c119_i32 dim 1 : vector<4x128xf32>, i32 -> vector<4x128xf32>
    %12 = vector.broadcast %2 : vector<1x128xf32> to vector<4x128xf32>
    %13 = arith.mulf %11, %12 : vector<4x128xf32>
    %14 = tpu.concatenate %3, %7, %10, %13 in 0 : vector<4x128xf32>, vector<4x128xf32>, vector<4x128xf32>, vector<4x128xf32> -> vector<16x128xf32>
    %cst = arith.constant dense<0.000000e+00> : vector<8x128xf32>
    %15 = tpu.matmul %4, %14, %cst {dimension_numbers = #tpu.dot_dimension_numbers<[1], [0], [0], [1], [0, 0, 1, 1], [], []>} : vector<8x16xf32>, vector<16x128xf32>, vector<8x128xf32> -> vector<8x128xf32>
    %c0_7 = arith.constant 0 : index
    %c0_8 = arith.constant 0 : index
    %16 = vector.load %arg6[%c0_7, %c0_8] : memref<8x1xf32, #tpu.memory_space<vmem>>, vector<8x1xf32>
    %17 = vector.broadcast %16 : vector<8x1xf32> to vector<8x128xf32>
    %18 = arith.addf %15, %17 : vector<8x128xf32>
    %19 = arith.negf %18 : vector<8x128xf32>
    %20 = math.exp %19 : vector<8x128xf32>
    %cst_9 = arith.constant 1.000000e+00 : f32
    %21 = vector.broadcast %cst_9 : f32 to vector<8x128xf32>
    %22 = arith.addf %21, %20 : vector<8x128xf32>
    %23 = arith.divf %21, %22 : vector<8x128xf32>
    %24 = arith.mulf %18, %23 : vector<8x128xf32>
    %c0_10 = arith.constant 0 : index
    %c0_11 = arith.constant 0 : index
    %25 = vector.load %arg2[%c0_10, %c0_11] : memref<1x128xf32, #tpu.memory_space<vmem>>, vector<1x128xf32>
    %26 = vector.broadcast %25 : vector<1x128xf32> to vector<8x128xf32>
    %27 = arith.addf %24, %26 : vector<8x128xf32>
    %c0_12 = arith.constant 0 : index
    %c0_13 = arith.constant 0 : index
    %28 = vector.load %arg7[%c0_12, %c0_13] : memref<8x32xf32, #tpu.memory_space<vmem>>, vector<8x32xf32>
    %c127_i32_14 = arith.constant 127 : i32
    %29 = tpu.dynamic_rotate %27 by %c127_i32_14 dim 1 : vector<8x128xf32>, i32 -> vector<8x128xf32>
    %30 = vector.broadcast %0 : vector<1x128xf32> to vector<8x128xf32>
    %31 = arith.mulf %29, %30 : vector<8x128xf32>
    %c120_i32_15 = arith.constant 120 : i32
    %32 = tpu.dynamic_rotate %27 by %c120_i32_15 dim 1 : vector<8x128xf32>, i32 -> vector<8x128xf32>
    %33 = vector.broadcast %1 : vector<1x128xf32> to vector<8x128xf32>
    %34 = arith.mulf %32, %33 : vector<8x128xf32>
    %c119_i32_16 = arith.constant 119 : i32
    %35 = tpu.dynamic_rotate %27 by %c119_i32_16 dim 1 : vector<8x128xf32>, i32 -> vector<8x128xf32>
    %36 = vector.broadcast %2 : vector<1x128xf32> to vector<8x128xf32>
    %37 = arith.mulf %35, %36 : vector<8x128xf32>
    %38 = tpu.concatenate %27, %31, %34, %37 in 0 : vector<8x128xf32>, vector<8x128xf32>, vector<8x128xf32>, vector<8x128xf32> -> vector<32x128xf32>
    %cst_17 = arith.constant dense<0.000000e+00> : vector<8x128xf32>
    %39 = tpu.matmul %28, %38, %cst_17 {dimension_numbers = #tpu.dot_dimension_numbers<[1], [0], [0], [1], [0, 0, 1, 1], [], []>} : vector<8x32xf32>, vector<32x128xf32>, vector<8x128xf32> -> vector<8x128xf32>
    %c0_18 = arith.constant 0 : index
    %c0_19 = arith.constant 0 : index
    %40 = vector.load %arg8[%c0_18, %c0_19] : memref<8x1xf32, #tpu.memory_space<vmem>>, vector<8x1xf32>
    %41 = vector.broadcast %40 : vector<8x1xf32> to vector<8x128xf32>
    %42 = arith.addf %39, %41 : vector<8x128xf32>
    %43 = arith.negf %42 : vector<8x128xf32>
    %44 = math.exp %43 : vector<8x128xf32>
    %cst_20 = arith.constant 1.000000e+00 : f32
    %45 = vector.broadcast %cst_20 : f32 to vector<8x128xf32>
    %46 = arith.addf %45, %44 : vector<8x128xf32>
    %47 = arith.divf %45, %46 : vector<8x128xf32>
    %48 = arith.mulf %42, %47 : vector<8x128xf32>
    %c0_21 = arith.constant 0 : index
    %c0_22 = arith.constant 0 : index
    %49 = vector.load %arg9[%c0_21, %c0_22] : memref<8x4xf32, #tpu.memory_space<vmem>>, vector<8x4xf32>
    %cst_23 = arith.constant dense<0.000000e+00> : vector<8x128xf32>
    %50 = tpu.matmul %49, %3, %cst_23 {dimension_numbers = #tpu.dot_dimension_numbers<[1], [0], [0], [1], [0, 0, 1, 1], [], []>} : vector<8x4xf32>, vector<4x128xf32>, vector<8x128xf32> -> vector<8x128xf32>
    %c0_24 = arith.constant 0 : index
    %c0_25 = arith.constant 0 : index
    %51 = vector.load %arg10[%c0_24, %c0_25] : memref<8x1xf32, #tpu.memory_space<vmem>>, vector<8x1xf32>
    %52 = vector.broadcast %51 : vector<8x1xf32> to vector<8x128xf32>
    %53 = arith.addf %50, %52 : vector<8x128xf32>
    %54 = arith.negf %53 : vector<8x128xf32>
    %55 = math.exp %54 : vector<8x128xf32>
    %cst_26 = arith.constant 1.000000e+00 : f32
    %56 = vector.broadcast %cst_26 : f32 to vector<8x128xf32>
    %57 = arith.addf %56, %55 : vector<8x128xf32>
    %58 = arith.divf %56, %57 : vector<8x128xf32>
    %59 = arith.mulf %53, %58 : vector<8x128xf32>
    %60 = arith.addf %48, %59 : vector<8x128xf32>
    %c0_27 = arith.constant 0 : index
    %c0_28 = arith.constant 0 : index
    %61 = vector.load %arg11[%c0_27, %c0_28] : memref<8x128xf32, #tpu.memory_space<vmem>>, vector<8x128xf32>
    tpu.vector_store %arg11[%c0_27, %c0_28], %60 {strides = array<i32>} : memref<8x128xf32, #tpu.memory_space<vmem>>, vector<8x128xf32>,
    return
  }
  func.func @transform_0(%arg0: i32) -> (i32, i32) {
    %c0_i32 = arith.constant 0 : i32
    %c0_i32_0 = arith.constant 0 : i32
    %c0_i32_1 = arith.constant 0 : i32
    return %c0_i32, %c0_i32_0 : i32, i32
  }
  func.func @transform_1(%arg0: i32) -> (i32, i32) {
    %c0_i32 = arith.constant 0 : i32
    %c0_i32_0 = arith.constant 0 : i32
    %c0_i32_1 = arith.constant 0 : i32
    return %c0_i32, %c0_i32_0 : i32, i32
  }
  func.func @transform_2(%arg0: i32) -> (i32, i32) {
    %c0_i32 = arith.constant 0 : i32
    %c0_i32_0 = arith.constant 0 : i32
    %c0_i32_1 = arith.constant 0 : i32
    return %c0_i32, %c0_i32_0 : i32, i32
  }
  func.func @transform_3(%arg0: i32) -> (i32, i32) {
    %c0_i32 = arith.constant 0 : i32
    %c0_i32_0 = arith.constant 0 : i32
    %c0_i32_1 = arith.constant 0 : i32
    return %c0_i32, %c0_i32_0 : i32, i32
  }
  func.func @transform_4(%arg0: i32) -> (i32, i32) {
    %c0_i32 = arith.constant 0 : i32
    %c0_i32_0 = arith.constant 0 : i32
    %c0_i32_1 = arith.constant 0 : i32
    return %c0_i32, %c0_i32_0 : i32, i32
  }
  func.func @transform_5(%arg0: i32) -> (i32, i32) {
    %c0_i32 = arith.constant 0 : i32
    %c0_i32_0 = arith.constant 0 : i32
    %c0_i32_1 = arith.constant 0 : i32
    return %c0_i32, %c0_i32_0 : i32, i32
  }
  func.func @transform_6(%arg0: i32) -> (i32, i32) {
    %c0_i32 = arith.constant 0 : i32
    %c0_i32_0 = arith.constant 0 : i32
    %c0_i32_1 = arith.constant 0 : i32
    return %c0_i32, %c0_i32_0 : i32, i32
  }
  func.func @transform_7(%arg0: i32) -> (i32, i32) {
    %c0_i32 = arith.constant 0 : i32
    %c0_i32_0 = arith.constant 0 : i32
    %c0_i32_1 = arith.constant 0 : i32
    return %c0_i32, %c0_i32_0 : i32, i32
  }
  func.func @transform_8(%arg0: i32) -> (i32, i32) {
    %c0_i32 = arith.constant 0 : i32
    %c0_i32_0 = arith.constant 0 : i32
    %c0_i32_1 = arith.constant 0 : i32
    return %c0_i32, %c0_i32_0 : i32, i32
  }
  func.func @transform_9(%arg0: i32) -> (i32, i32) {
    %c0_i32 = arith.constant 0 : i32
    %c0_i32_0 = arith.constant 0 : i32
    %c0_i32_1 = arith.constant 0 : i32
    return %c0_i32, %c0_i32_0 : i32, i32
  }
  func.func @transform_10(%arg0: i32) -> (i32, i32) {
    %c0_i32 = arith.constant 0 : i32
    %c0_i32_0 = arith.constant 0 : i32
    %c0_i32_1 = arith.constant 0 : i32
    return %c0_i32, %c0_i32_0 : i32, i32
  }
}

</mosaic_0001>

<bundles_post_ra>
// kernel: unet_encoder_layer.1
= control target key start
LH: loop header
LB: loop body
LE: loop exit
PB: predicated region body
PF: predicated region fallthrough
CT: control target
= control target key end

     0   :  { %v436_v1 = vmov 0.0|0.0   ;;  %s437_s15 = smov 127   ;;  %s438_s16 = smov 120   ;;  %vm439_vm0 = vmmov 0   ;;  %v440_v2 = vmov 0.0   ;;  %v441_v3 = vmov 0   ;;  %s543_s0 = inlined_call_operand.vmem [shape: f32[4,128], index: 0, kind: input, shape index: {}]   ;;  %s544_s5 = inlined_call_operand.vmem [shape: f32[8,1], index: 5, kind: input, shape index: {}]   ;;  %s545_s2 = inlined_call_operand.vmem [shape: f32[1,128], index: 2, kind: input, shape index: {}]   ;;  %s546_s3 = inlined_call_operand.vmem [shape: f32[1,128], index: 3, kind: input, shape index: {}]   ;;  %s547_s4 = inlined_call_operand.vmem [shape: f32[8,16], index: 4, kind: input, shape index: {}]   ;;  %s548_s8 = inlined_call_operand.vmem [shape: f32[8,4], index: 8, kind: input, shape index: {}]   ;;  %s549_s1 = inlined_call_operand.vmem [shape: f32[1,128], index: 1, kind: input, shape index: {}]   ;;  %s550_s7 = inlined_call_operand.vmem [shape: f32[8,1], index: 7, kind: input, shape index: {}]   ;;  %s551_s9 = inlined_call_operand.vmem [shape: f32[8,1], index: 9, kind: input, shape index: {}]   ;;  %s552_s6 = inlined_call_operand.vmem [shape: f32[8,32], index: 6, kind: input, shape index: {}]   ;;  %s553_s10 = inlined_call_operand.vmem [shape: f32[8,128], index: 10, kind: output, shape index: {}]  }
   0x1   :  { %v38_v0 = vld [vmem:[%s543_s0] sm:$0xf]  ;;  %406 = vmatprep.subr.bf16.mxu0 %v436_v1  ;;  %409 = vmatprep.subr.bf16.mxu1 %v436_v1  ;;  %s442_s18 = smov 119   ;;  %v43_v5 = vlaneseq  ;;  %vm73_vm1 = vcmask 1043456   ;;  %vm82_vm2 = vcmask 130048   ;;  %vm275_vm3 = vcmask 31744  }
   0x2   :  { %40 = vrot.lane.b32.xlu0 %v38_v0, %s437_s15  ;;  %49 = vrot.lane.b32.xlu1 %v38_v0, %s438_s16  ;;  %v76_v4 = vld [vmem:[%s544_s5] sm:$0xff]  ;;  %vm187_vm4 = vcmask 261120  }
   0x3   :  { %387 = vmatprep.mubr.msk.f32.mxu0 %vm439_vm0, %v440_v2  ;;  %398 = vmatprep.mubr.msk.f32.mxu1 %vm439_vm0, %v440_v2  ;;  %v44_v6 = vshrl.u32 %v43_v5, 7  ;;  %v35_v8 = vld [vmem:[%s545_s2] sm:$0x1] }
   0x4   :  { %422 = vset.pattern.permute.xlu1 %v441_v3  ;;  %423 = vset.pattern.permute.xlu0 %v441_v3  ;;  %v36_v9 = vld [vmem:[%s546_s3] sm:$0x1] }
   0x5   :  { %v45_v7 = vsub.s32 0, %v44_v6  ;;  %v37_v11 = vmul.f32 %v36_v9, %v35_v8  ;;  %v39_v25 = vld [vmem:[%s547_s4] sm:$0xff] }
   0x6   :  { %58 = vrot.lane.b32.xlu0 %v38_v0, %s442_s18  ;;  %79 = vperm.xlu1 %422, %v76_v4   ;;  %v268_v26 = vld [vmem:[%s548_s8] sm:$0xff] }
   0x7   :  { %v46_v10 = vrot.slane %v35_v8, %v45_v7  ;;  %v64_v14 = vrot.slane %v37_v11, %v45_v7  ;;  %v55_v15 = vrot.slane %v36_v9, %v45_v7  ;;  %v367_v35 = vld [vmem:[%s549_s1] ss:$0 sm:$0xff] }
   0x8   :  { %v181_v38 = vld [vmem:[%s550_s7] sm:$0xff] }
   0x9   :  { %v269_v39 = vld [vmem:[%s551_s9] sm:$0xff] }
   0xa   :  { %v171_v50 = vld [vmem:[%s552_s6] sm:$0xff] }
  0x74   :  { %v41_v12 = vpop.permute.xlu0 %40  ;;  %v50_v16 = vpop.permute.xlu1 %49 }
  0x75   :  { %v48_v13 = vmul.f32 %v46_v10, %v41_v12  ;;  %v57_v20 = vmul.f32 %v55_v15, %v50_v16 }
  0x77   :  { %v68_v18 = vrot.slane %v48_v13, 4 }
  0x78   :  { %v59_v17 = vpop.permute.xlu0 %58 }
  0x79   :  { %v66_v19 = vmul.f32 %v64_v14, %v59_v17  ;;  %v74_v22 = vsel %vm73_vm1, %v38_v0, %v68_v18 }
  0x7b   :  { %v71_v21 = vrot.slane %v66_v19, 4 }
  0x7d   :  { %v75_v23 = vsel %vm73_vm1, %v57_v20, %v71_v21 }
  0x7e   :  { %v407_v24 = vpack.c.bf16 %v75_v23, %v74_v22 }
  0x80   :  { %408 = vmatpush3.bf16.msra.mxu0 %v407_v24 }
  0x81   :  { %401 = vmatprep.subr.mxu0 %v440_v2 }
  0x83   :  { %388 = vmatmul.mubr.msk.f32.vlgmr.msra.gmra.mrb[0].mxu0 %vm82_vm2, %v39_v25 }
  0x84   :  { %402 = vmatpush3.msk.msra.mxu0 %vm73_vm1, %v38_v0  ;;  %403 = vmatprep.mubr.msk.f32.mxu0 %vm439_vm0, %v440_v2 }
  0x85   :  { %v80_v27 = vpop.permute.xlu1 %79 }
  0x87   :  { %404 = vmatmul.mubr.msk.f32.vlgmr.msra.gmra.mrb[2].mxu0 %vm275_vm3, %v268_v26 }
 0x156   :  { %v152_v28 = vpop.f32.mrb[0].mxu0 }
 0x157   :  { %v153_v29 = vadd.f32 %v152_v28, %v80_v27  ;;  %v389_v30 = vpop.f32.mrb[1].mxu0 }
 0x159   :  { %v366_v31 = vmul.f32 -1.442695, %v153_v29 }
 0x15a   :  { %v348_v40 = vpop.f32.mrb[2].mxu0 }
 0x15b   :  { %424 = vpow2.f32 %v366_v31  ;;  %v405_v41 = vpop.f32.mrb[3].mxu0 }
 0x165   :  { %v425_v32 = vpop.eup %424 }
 0x166   :  { %v159_v33 = vadd.f32 1.0, %v425_v32 }
 0x168   :  { %426 = vrcp.f32 %v159_v33 }
 0x172   :  { %v427_v34 = vpop.eup %426 }
 0x173   :  { %v162_v36 = vmul.f32 %v427_v34, %v153_v29 }
 0x175   :  { %v170_v37 = vadd.f32 %v367_v35, %v162_v36 }
 0x177   :  { %175 = vrot.lane.b32.xlu1 %v170_v37, %s438_s16  ;;  %172 = vrot.lane.b32.xlu0 %v170_v37, %s437_s15 }
 0x17b   :  { %184 = vperm.xlu1 %422, %v181_v38   ;;  %178 = vrot.lane.b32.xlu0 %v170_v37, %s442_s18 }
 0x17f   :  { %272 = vperm.xlu0 %423, %v269_v39  }
 0x1e9   :  { %v173_v42 = vpop.permute.xlu0 %172  ;;  %v176_v44 = vpop.permute.xlu1 %175 }
 0x1ea   :  { %v174_v43 = vmul.f32 %v173_v42, %v46_v10  ;;  %v177_v47 = vmul.f32 %v176_v44, %v55_v15 }
 0x1ec   :  { %v410_v45 = vpack.c.bf16 %v174_v43, %v170_v37 }
 0x1ed   :  { %v179_v46 = vpop.permute.xlu0 %178 }
 0x1ee   :  { %v180_v48 = vmul.f32 %v179_v46, %v64_v14  ;;  %411 = vmatpush3.bf16.msra.mxu1 %v410_v45 }
 0x1ef   :  { %412 = vmatprep.subr.bf16.mxu1 %v436_v1 }
 0x1f0   :  { %v413_v49 = vpack.c.bf16 %v180_v48, %v177_v47 }
 0x1f2   :  { %414 = vmatpush3.bf16.msra.mxu1 %v413_v49 }
 0x1f5   :  { %399 = vmatmul.mubr.msk.f32.vlgmr.msra.gmra.mrb[0].mxu1 %vm187_vm4, %v171_v50 }
 0x1fa   :  { %v185_v54 = vpop.permute.xlu1 %184 }
 0x1fe   :  { %v273_v51 = vpop.permute.xlu0 %272 }
 0x1ff   :  { %v349_v52 = vadd.f32 %v348_v40, %v273_v51 }
 0x201   :  { %v372_v53 = vmul.f32 -1.442695, %v349_v52 }
 0x203   :  { %428 = vpow2.f32 %v372_v53 }
 0x20d   :  { %v429_v59 = vpop.eup %428 }
 0x20e   :  { %v355_v60 = vadd.f32 1.0, %v429_v59 }
 0x2c8   :  { %v257_v55 = vpop.f32.mrb[0].mxu1 }
 0x2c9   :  { %v258_v56 = vadd.f32 %v257_v55, %v185_v54  ;;  %v400_v57 = vpop.f32.mrb[1].mxu1 }
 0x2cb   :  { %v369_v58 = vmul.f32 -1.442695, %v258_v56 }
 0x2cd   :  { %430 = vpow2.f32 %v369_v58 }
 0x2ce   :  { %432 = vrcp.f32 %v355_v60 }
 0x2d7   :  { %v431_v61 = vpop.eup %430 }
 0x2d8   :  { %v264_v62 = vadd.f32 1.0, %v431_v61  ;;  %v433_v63 = vpop.eup %432 }
 0x2d9   :  { %v358_v1 = vmul.f32 %v433_v63, %v349_v52 }
 0x2da   :  { %434 = vrcp.f32 %v264_v62 }
 0x2e4   :  { %v435_v0 = vpop.eup %434 }
 0x2e5   :  { %v267_v2 = vmul.f32 %v435_v0, %v258_v56 }
 0x2e7   :  { %v359_v3 = vadd.f32 %v358_v1, %v267_v2 }
 0x2e9   :  { %360 = vst [vmem:[%s553_s10] sm:$0xff] %v359_v3 }

</bundles_post_ra>
